<compile_context>
chip_gen: v7x
topology: tpu7x:2x2x1
jax: 0.10.0
libtpu: 0.0.40
codegen_flags: <defaults>
</compile_context>

<pallas_src>
import functools

import jax
import jax.numpy as jnp
from jax.experimental import pallas as pl
from jax.experimental.pallas import tpu as pltpu

LANE = 128      # TPU vreg lane width: pad feature (output) dims to this.
SUBLANE = 16    # Row granularity covering both bf16 (16) and f32 (8) tiles.


def ann_kernel(x_ref, w1_ref, b1_ref, w2_ref, b2_ref, w3_ref, b3_ref, o_ref):
    # Layer 1: Linear + ReLU.  K = 8 (un-padded input features); f32 MXU acc.
    h1 = jnp.dot(x_ref[...], w1_ref[...], preferred_element_type=jnp.float32)
    h1 = jnp.maximum(h1 + b1_ref[...], 0.0)
    # Layer 2: Linear + ReLU (128 x 128 padded, zero rows/cols are exact 0s).
    h2 = jnp.dot(h1, w2_ref[...], preferred_element_type=jnp.float32)
    h2 = jnp.maximum(h2 + b2_ref[...], 0.0)
    # Output layer: Linear, no activation.  Lane-dense 128-wide bf16 store.
    out = jnp.dot(h2, w3_ref[...], preferred_element_type=jnp.float32)
    o_ref[...] = (out + b3_ref[...]).astype(o_ref.dtype)


def _round_up(n, m):
    return ((n + m - 1) // m) * m


def _cdiv(a, b):
    return -(-a // b)


def _choose_batch_tiling(batch, *, sublane=SUBLANE,
                         tb_single_max=128, tb_max=1024):
    """Pick (padded_batch, batch_tile).

    Small B: a single tile exactly the sublane-padded batch (no 8x over-pad).
    Large B: tiles of up to tb_max rows, keeping >= 2 grid steps so the
    "parallel" batch axis can be sharded across v7x's two TensorCores.
    """
    b_p = _round_up(max(batch, 1), sublane)
    if b_p <= tb_single_max:
        return b_p, b_p
    n_tiles = max(2, _cdiv(b_p, tb_max))
    tb = min(tb_max, _round_up(_cdiv(b_p, n_tiles), sublane))
    b_p = _round_up(b_p, tb)
    return b_p, tb


def prepare_params(w1, b1, w2, b2, w3, b3):
    """One-time padding of weights/biases to the 128-lane width (hoisted out of
    the per-call path).  Weights are [in, out]; padded rows/cols and biases are
    exact zeros so padded lanes are 0 pre-ReLU and 0 in padded output columns.
    """
    f_in, h1 = w1.shape
    h2 = w2.shape[1]
    f_out = w3.shape[1]
    h1_p, h2_p, f_out_p = (_round_up(d, LANE) for d in (h1, h2, f_out))

    w1p = jnp.zeros((f_in, h1_p), jnp.float32).at[:, :h1].set(w1)
    w2p = jnp.zeros((h1_p, h2_p), jnp.float32).at[:h1, :h2].set(w2)
    w3p = jnp.zeros((h2_p, f_out_p), jnp.float32).at[:h2, :f_out].set(w3)
    b1p = jnp.zeros((1, h1_p), jnp.float32).at[:, :h1].set(b1)
    b2p = jnp.zeros((1, h2_p), jnp.float32).at[:, :h2].set(b2)
    b3p = jnp.zeros((1, f_out_p), jnp.float32).at[:, :f_out].set(b3)
    return (w1p, b1p, w2p, b2p, w3p, b3p), f_out


@functools.partial(jax.jit, static_argnames=("f_out",))
def ann_forward(x, params, *, f_out):
    """x: [B, in_features] f32; params: padded weights from prepare_params().
    Returns [B, f_out] f32."""
    w1p, b1p, w2p, b2p, w3p, b3p = params
    B, f_in = x.shape
    h1_p = w1p.shape[1]
    h2_p = w2p.shape[1]
    f_out_p = w3p.shape[1]

    b_p, tb = _choose_batch_tiling(B)
    grid = (b_p // tb,)

    xp = x.astype(jnp.float32)
    if b_p != B:
        xp = jnp.zeros((b_p, f_in), jnp.float32).at[:B].set(xp)

    def resident(shape):
        # Same block every grid step -> stays VMEM-resident across iterations.
        return pl.BlockSpec(shape, lambda i: (0,) * len(shape))

    flops = 2 * b_p * (f_in * h1_p + h1_p * h2_p + h2_p * f_out_p)
    bytes_accessed = (
        int(xp.size) * 4                      # x read (f32, un-padded lanes)
        + b_p * f_out_p * 2                   # bf16 output writeback
        + sum(int(a.size) * 4 for a in (w1p, b1p, w2p, b2p, w3p, b3p))
    )
    cost = pl.CostEstimate(flops=flops, transcendentals=0,
                           bytes_accessed=bytes_accessed)

    out_padded = pl.pallas_call(
        ann_kernel,
        out_shape=jax.ShapeDtypeStruct((b_p, f_out_p), jnp.bfloat16),
        grid_spec=pltpu.PrefetchScalarGridSpec(
            num_scalar_prefetch=0,
            grid=grid,
            in_specs=[
                # x: tiled over batch; last dim == full array dim (8) so the
                # (8,128) rule is satisfied without lane padding.
                pl.BlockSpec((tb, f_in), lambda i: (i, 0)),
                resident((f_in, h1_p)),
                resident((1, h1_p)),
                resident((h1_p, h2_p)),
                resident((1, h2_p)),
                resident((h2_p, f_out_p)),
                resident((1, f_out_p)),
            ],
            out_specs=pl.BlockSpec((tb, f_out_p), lambda i: (i, 0)),
        ),
        compiler_params=pltpu.CompilerParams(
            # Batch tiles are independent -> megacore-shardable on v7x.
            dimension_semantics=("parallel",),
        ),
        cost_estimate=cost,
    )(xp, w1p, b1p, w2p, b2p, w3p, b3p)

    # Slice to the logical result and upcast the (tiny) output back to f32.
    return out_padded[:B, :f_out].astype(jnp.float32)


def init_params(key, input_features=8, hidden1=20, hidden2=20, out_features=2):
    """Deterministic init mimicking nn.Linear's uniform(-1/sqrt(fan_in), ...)."""
    ks = jax.random.split(key, 6)

    def linear(kw, kb, fan_in, fan_out):
        bound = 1.0 / jnp.sqrt(float(fan_in))
        # stored as [in, out] so the kernel computes x @ W
        w = jax.random.uniform(kw, (fan_in, fan_out), jnp.float32, -bound, bound)
        b = jax.random.uniform(kb, (1, fan_out), jnp.float32, -bound, bound)
        return w, b

    w1, b1 = linear(ks[0], ks[1], input_features, hidden1)
    w2, b2 = linear(ks[2], ks[3], hidden1, hidden2)
    w3, b3 = linear(ks[4], ks[5], hidden2, out_features)
    return w1, b1, w2, b2, w3, b3


if __name__ == "__main__":
    key = jax.random.PRNGKey(0)
    k_x, k_p = jax.random.split(key)

    batch = 16
    input_features, hidden1, hidden2, out_features = 8, 20, 20, 2

    x = jax.random.normal(k_x, (batch, input_features), jnp.float32)
    w1, b1, w2, b2, w3, b3 = init_params(
        k_p, input_features, hidden1, hidden2, out_features
    )

    # Pad / stage the weights once (outside the per-call path).
    params, f_out = prepare_params(w1, b1, w2, b2, w3, b3)

    out = ann_forward(x, params, f_out=f_out)
    out = jax.block_until_ready(out)
    assert out.shape == (batch, out_features)
    assert out.dtype == jnp.float32

    # Pure-f32 reference; the kernel differs only by the bf16 output store and
    # MXU f32-pass precision, both well inside this tolerance.
    h = jnp.maximum(x @ w1 + b1, 0.0)
    h = jnp.maximum(h @ w2 + b2, 0.0)
    ref = h @ w3 + b3
    assert jnp.allclose(out, ref, atol=2e-2, rtol=2e-2), "mismatch vs f32 reference"

    print("KERNEL_OK")
</pallas_src>

<mosaic_0001>
module attributes {stable_mosaic.version = 11 : i64} {
  func.func @ann_kernel(%arg0: i32, %arg1: memref<16x8xf32, #tpu.memory_space<vmem>>, %arg2: memref<8x128xf32, #tpu.memory_space<vmem>>, %arg3: memref<1x128xf32, #tpu.memory_space<vmem>>, %arg4: memref<128x128xf32, #tpu.memory_space<vmem>>, %arg5: memref<1x128xf32, #tpu.memory_space<vmem>>, %arg6: memref<128x128xf32, #tpu.memory_space<vmem>>, %arg7: memref<1x128xf32, #tpu.memory_space<vmem>>, %arg8: memref<16x128xbf16, #tpu.memory_space<vmem>>) attributes {dimension_semantics = [#tpu.dimension_semantics<parallel>], iteration_bounds = array<i64: 1>, scalar_prefetch = 0 : i64, scratch_operands = 0 : i64, tpu.core_type = #tpu.core_type<tc>, window_params = [{transform_indices = @transform_0, window_bounds = array<i64: 16, 8>}, {pipeline_mode = #tpu.pipeline_mode<synchronous>, transform_indices = @transform_1, window_bounds = array<i64: 8, 128>}, {pipeline_mode = #tpu.pipeline_mode<synchronous>, transform_indices = @transform_2, window_bounds = array<i64: 1, 128>}, {pipeline_mode = #tpu.pipeline_mode<synchronous>, transform_indices = @transform_3, window_bounds = array<i64: 128, 128>}, {pipeline_mode = #tpu.pipeline_mode<synchronous>, transform_indices = @transform_4, window_bounds = array<i64: 1, 128>}, {pipeline_mode = #tpu.pipeline_mode<synchronous>, transform_indices = @transform_5, window_bounds = array<i64: 128, 128>}, {pipeline_mode = #tpu.pipeline_mode<synchronous>, transform_indices = @transform_6, window_bounds = array<i64: 1, 128>}, {transform_indices = @transform_7, window_bounds = array<i64: 16, 128>}]} {
    %c0 = arith.constant 0 : index
    %c0_0 = arith.constant 0 : index
    %0 = vector.load %arg1[%c0, %c0_0] : memref<16x8xf32, #tpu.memory_space<vmem>>, vector<16x8xf32>
    %c0_1 = arith.constant 0 : index
    %c0_2 = arith.constant 0 : index
    %1 = vector.load %arg2[%c0_1, %c0_2] : memref<8x128xf32, #tpu.memory_space<vmem>>, vector<8x128xf32>
    %cst = arith.constant dense<0.000000e+00> : vector<16x128xf32>
    %2 = tpu.matmul %0, %1, %cst {dimension_numbers = #tpu.dot_dimension_numbers<[1], [0], [0], [1], [0, 0, 1, 1], [], []>} : vector<16x8xf32>, vector<8x128xf32>, vector<16x128xf32> -> vector<16x128xf32>
    %c0_3 = arith.constant 0 : index
    %c0_4 = arith.constant 0 : index
    %3 = vector.load %arg3[%c0_3, %c0_4] : memref<1x128xf32, #tpu.memory_space<vmem>>, vector<1x128xf32>
    %4 = vector.broadcast %3 : vector<1x128xf32> to vector<16x128xf32>
    %5 = arith.addf %2, %4 : vector<16x128xf32>
    %cst_5 = arith.constant 0.000000e+00 : f32
    %6 = vector.broadcast %cst_5 : f32 to vector<16x128xf32>
    %7 = arith.maximumf %5, %6 : vector<16x128xf32>
    %c0_6 = arith.constant 0 : index
    %c0_7 = arith.constant 0 : index
    %8 = vector.load %arg4[%c0_6, %c0_7] : memref<128x128xf32, #tpu.memory_space<vmem>>, vector<128x128xf32>
    %cst_8 = arith.constant dense<0.000000e+00> : vector<16x128xf32>
    %9 = tpu.matmul %7, %8, %cst_8 {dimension_numbers = #tpu.dot_dimension_numbers<[1], [0], [0], [1], [0, 0, 1, 1], [], []>} : vector<16x128xf32>, vector<128x128xf32>, vector<16x128xf32> -> vector<16x128xf32>
    %c0_9 = arith.constant 0 : index
    %c0_10 = arith.constant 0 : index
    %10 = vector.load %arg5[%c0_9, %c0_10] : memref<1x128xf32, #tpu.memory_space<vmem>>, vector<1x128xf32>
    %11 = vector.broadcast %10 : vector<1x128xf32> to vector<16x128xf32>
    %12 = arith.addf %9, %11 : vector<16x128xf32>
    %cst_11 = arith.constant 0.000000e+00 : f32
    %13 = vector.broadcast %cst_11 : f32 to vector<16x128xf32>
    %14 = arith.maximumf %12, %13 : vector<16x128xf32>
    %c0_12 = arith.constant 0 : index
    %c0_13 = arith.constant 0 : index
    %15 = vector.load %arg6[%c0_12, %c0_13] : memref<128x128xf32, #tpu.memory_space<vmem>>, vector<128x128xf32>
    %cst_14 = arith.constant dense<0.000000e+00> : vector<16x128xf32>
    %16 = tpu.matmul %14, %15, %cst_14 {dimension_numbers = #tpu.dot_dimension_numbers<[1], [0], [0], [1], [0, 0, 1, 1], [], []>} : vector<16x128xf32>, vector<128x128xf32>, vector<16x128xf32> -> vector<16x128xf32>
    %c0_15 = arith.constant 0 : index
    %c0_16 = arith.constant 0 : index
    %17 = vector.load %arg7[%c0_15, %c0_16] : memref<1x128xf32, #tpu.memory_space<vmem>>, vector<1x128xf32>
    %18 = vector.broadcast %17 : vector<1x128xf32> to vector<16x128xf32>
    %19 = arith.addf %16, %18 : vector<16x128xf32>
    %20 = arith.truncf %19 : vector<16x128xf32> to vector<16x128xbf16>
    %c0_17 = arith.constant 0 : index
    %c0_18 = arith.constant 0 : index
    %21 = vector.load %arg8[%c0_17, %c0_18] : memref<16x128xbf16, #tpu.memory_space<vmem>>, vector<16x128xbf16>
    tpu.vector_store %arg8[%c0_17, %c0_18], %20 {strides = array<i32>} : memref<16x128xbf16, #tpu.memory_space<vmem>>, vector<16x128xbf16>,
    return
  }
  func.func @transform_0(%arg0: i32) -> (i32, i32) {
    %c0_i32 = arith.constant 0 : i32
    %c0_i32_0 = arith.constant 0 : i32
    return %arg0, %c0_i32 : i32, i32
  }
  func.func @transform_1(%arg0: i32) -> (i32, i32) {
    %c0_i32 = arith.constant 0 : i32
    %c0_i32_0 = arith.constant 0 : i32
    %c0_i32_1 = arith.constant 0 : i32
    return %c0_i32, %c0_i32_0 : i32, i32
  }
  func.func @transform_2(%arg0: i32) -> (i32, i32) {
    %c0_i32 = arith.constant 0 : i32
    %c0_i32_0 = arith.constant 0 : i32
    %c0_i32_1 = arith.constant 0 : i32
    return %c0_i32, %c0_i32_0 : i32, i32
  }
  func.func @transform_3(%arg0: i32) -> (i32, i32) {
    %c0_i32 = arith.constant 0 : i32
    %c0_i32_0 = arith.constant 0 : i32
    %c0_i32_1 = arith.constant 0 : i32
    return %c0_i32, %c0_i32_0 : i32, i32
  }
  func.func @transform_4(%arg0: i32) -> (i32, i32) {
    %c0_i32 = arith.constant 0 : i32
    %c0_i32_0 = arith.constant 0 : i32
    %c0_i32_1 = arith.constant 0 : i32
    return %c0_i32, %c0_i32_0 : i32, i32
  }
  func.func @transform_5(%arg0: i32) -> (i32, i32) {
    %c0_i32 = arith.constant 0 : i32
    %c0_i32_0 = arith.constant 0 : i32
    %c0_i32_1 = arith.constant 0 : i32
    return %c0_i32, %c0_i32_0 : i32, i32
  }
  func.func @transform_6(%arg0: i32) -> (i32, i32) {
    %c0_i32 = arith.constant 0 : i32
    %c0_i32_0 = arith.constant 0 : i32
    %c0_i32_1 = arith.constant 0 : i32
    return %c0_i32, %c0_i32_0 : i32, i32
  }
  func.func @transform_7(%arg0: i32) -> (i32, i32) {
    %c0_i32 = arith.constant 0 : i32
    %c0_i32_0 = arith.constant 0 : i32
    return %arg0, %c0_i32 : i32, i32
  }
}

</mosaic_0001>

<bundles_post_ra>
// kernel: ann_forward.1
= control target key start
LH: loop header
LB: loop body
LE: loop exit
PB: predicated region body
PF: predicated region fallthrough
CT: control target
= control target key end

     0   :  { %12 = vsyncpa [#allocation3], 0  ;;  %s695_s0 = inlined_call_operand.vmem [shape: f32[16,8], index: 0, kind: input, shape index: {}]   ;;  %s696_s1 = inlined_call_operand.vmem [shape: f32[8,128], index: 1, kind: input, shape index: {}]   ;;  %s697_s2 = inlined_call_operand.vmem [shape: f32[1,128], index: 2, kind: input, shape index: {}]   ;;  %s698_s3 = inlined_call_operand.hbm [shape: f32[128,128], index: 3, kind: input, shape index: {}]   ;;  %s699_s4 = inlined_call_operand.vmem [shape: f32[1,128], index: 4, kind: input, shape index: {}]   ;;  %s700_s5 = inlined_call_operand.hbm [shape: f32[128,128], index: 5, kind: input, shape index: {}]   ;;  %s701_s6 = inlined_call_operand.vmem [shape: f32[1,128], index: 6, kind: input, shape index: {}]   ;;  %s702_s7 = inlined_call_operand.vmem [shape: bf16[16,128], index: 7, kind: output, shape index: {}]  }
   0x1   :  { %13 = vsyncpa [#allocation5], 0  ;;  %s606_s24 = smov [#allocation2]   ;;  %s558_s28 = scalar_lea.hbm %s698_s3, 2048 }
   0x2   :  { %s25_s25 = sshll.u32 %s606_s24, 4  ;;  %p559_p0 = scmp.ne.s32.totalorder %s698_s3, %s558_s28  ;;  %s26_s25 = int_to_ptr.vmem [resolvable:$true] %s25_s25 }
   0x3   :  { %p562_p1 = scmp.lt.u32.totalorder %s558_s28, %s698_s3 }
   0x5   :  { %p564_p2 = pnand %p562_p1, %p559_p0 }
   0x7   :  { %567 = shalt.err (!%p564_p2)
}
   0x8   :  { %s568_s10 = scalar_lea.vmem %s26_s25, 2048  ;;  %p573_p4 = scmp.lt.s32.totalorder %s26_s25, %s26_s25 }
   0x9   :  { %p569_p3 = scmp.ne.s32.totalorder %s26_s25, %s568_s10  ;;  %p574_p5 = scmp.lt.s32.totalorder %s568_s10, %s568_s10 }
   0xb   :  { %p575_p6 = por %p574_p5, %p573_p4 }
   0xd   :  { %p576_p7 = pnand %p575_p6, %p569_p3 }
   0xf   :  { %579 = shalt.err (!%p576_p7)
}
  0x10   :  { %s607_s11 = smov 128   ;;  %s608_s12 = smov 8  }
  0x11   :  { %31 = dma.hbm_to_vmem [thread:$0]  %s698_s3, 2048, %s26_s25, [#allocation3], %s607_s11, %s607_s11, %s608_s12  }
  0x12   :  { %s609_s15 = smov [#allocation4]   ;;  %s580_s19 = scalar_lea.hbm %s700_s5, 2048 }
  0x13   :  { %s39_s16 = sshll.u32 %s609_s15, 4  ;;  %p581_p8 = scmp.ne.s32.totalorder %s700_s5, %s580_s19  ;;  %s40_s16 = int_to_ptr.vmem [resolvable:$true] %s39_s16 }
  0x14   :  { %p584_p9 = scmp.lt.u32.totalorder %s580_s19, %s700_s5 }
  0x16   :  { %p586_p10 = pnand %p584_p9, %p581_p8 }
  0x18   :  { %589 = shalt.err (!%p586_p10)
}
  0x19   :  { %s590_s24 = scalar_lea.vmem %s40_s16, 2048  ;;  %p595_p12 = scmp.lt.s32.totalorder %s40_s16, %s40_s16 }
  0x1a   :  { %p591_p11 = scmp.ne.s32.totalorder %s40_s16, %s590_s24  ;;  %p596_p13 = scmp.lt.s32.totalorder %s590_s24, %s590_s24 }
  0x1c   :  { %p597_p0 = por %p596_p13, %p595_p12 }
  0x1e   :  { %p598_p1 = pnand %p597_p0, %p591_p11 }
  0x20   :  { %601 = shalt.err (!%p598_p1)
}
  0x21   :  { %45 = dma.hbm_to_vmem [thread:$0]  %s700_s5, 2048, %s40_s16, [#allocation5], %s607_s11, %s607_s11, %s608_s12  }
  0x22   :  { %602 = dma.done.wait [#allocation3], 2048  }
  0x23   :  { %603 = vsyncadd [#allocation3], 4294965248 }
  0x24   :  { %604 = dma.done.wait [#allocation5], 2048  }
  0x25   :  { %605 = vsyncadd [#allocation5], 4294965248  ;;  %vm64_vm0 = vcmask 64512   ;;  %v56_v0 = vld [vmem:[%s696_s1] sm:$0xff]  ;;  %v55_v2 = vld [vmem:[%s695_s0 + $0x8] sm:$0xff] }
  0x26   :  { %v54_v1 = vld [vmem:[%s695_s0] sm:$0xff]  ;;  %415 = vmatprep.subr.mxu0 %v56_v0  ;;  %v149_v4 = vld [vmem:[#allocation2 + $0x8] sm:$0xff]  ;;  %v150_v5 = vld [vmem:[#allocation2 + $0x10] sm:$0xff] }
  0x27   :  { %417 = vmatprep.mubr.msk.f32.mxu0 %vm64_vm0, %v54_v1  ;;  %v148_v3 = vld [vmem:[#allocation2] sm:$0xff]  ;;  %416 = vmatpush3.msra.mxu0 %v56_v0  ;;  %v151_v7 = vld [vmem:[#allocation2 + $0x18] sm:$0xff]  ;;  %v153_v10 = vld [vmem:[#allocation2 + $0x28] sm:$0xff] }
  0x28   :  { %v490_v6 = vpack.c.bf16 %v149_v4, %v148_v3  ;;  %418 = vmatmul.mubr.msk.f32.vlgmr.msra.gmra.mrb[0].mxu0 %vm64_vm0, %v55_v2  ;;  %v494_v8 = vpack.c.bf16 %v151_v7, %v150_v5  ;;  %v152_v9 = vld [vmem:[#allocation2 + $0x20] sm:$0xff]  ;;  %v154_v12 = vld [vmem:[#allocation2 + $0x30] sm:$0xff]  ;;  %v155_v13 = vld [vmem:[#allocation2 + $0x38] sm:$0xff] }
  0x29   :  { %v498_v11 = vpack.c.bf16 %v153_v10, %v152_v9  ;;  %v502_v14 = vpack.c.bf16 %v155_v13, %v154_v12  ;;  %v156_v15 = vld [vmem:[#allocation2 + $0x40] sm:$0xff]  ;;  %v157_v16 = vld [vmem:[#allocation2 + $0x48] sm:$0xff]  ;;  %v158_v18 = vld [vmem:[#allocation2 + $0x50] sm:$0xff] }
  0x2a   :  { %491 = vmatprep.subr.bf16.mxu1 %v490_v6  ;;  %v506_v17 = vpack.c.bf16 %v157_v16, %v156_v15  ;;  %v159_v19 = vld [vmem:[#allocation2 + $0x58] sm:$0xff]  ;;  %v160_v21 = vld [vmem:[#allocation2 + $0x60] sm:$0xff]  ;;  %v161_v22 = vld [vmem:[#allocation2 + $0x68] sm:$0xff] }
  0x2b   :  { %493 = vmatpush3.bf16.msra.mxu1 %v490_v6  ;;  %v510_v20 = vpack.c.bf16 %v159_v19, %v158_v18  ;;  %v514_v23 = vpack.c.bf16 %v161_v22, %v160_v21  ;;  %v162_v24 = vld [vmem:[#allocation2 + $0x70] sm:$0xff]  ;;  %v163_v25 = vld [vmem:[#allocation2 + $0x78] sm:$0xff]  ;;  %v248_v27 = vld [vmem:[#allocation4] sm:$0xff] }
  0x2c   :  { %495 = vmatprep.subr.bf16.mxu1 %v494_v8  ;;  %v518_v26 = vpack.c.bf16 %v163_v25, %v162_v24  ;;  %v249_v28 = vld [vmem:[#allocation4 + $0x8] sm:$0xff]  ;;  %v250_v29 = vld [vmem:[#allocation4 + $0x10] sm:$0xff]  ;;  %v251_v31 = vld [vmem:[#allocation4 + $0x18] sm:$0xff] }
  0x2d   :  { %v522_v30 = vpack.c.bf16 %v249_v28, %v248_v27  ;;  %v526_v32 = vpack.c.bf16 %v251_v31, %v250_v29  ;;  %v252_v33 = vld [vmem:[#allocation4 + $0x20] sm:$0xff]  ;;  %v253_v34 = vld [vmem:[#allocation4 + $0x28] sm:$0xff]  ;;  %v254_v36 = vld [vmem:[#allocation4 + $0x30] sm:$0xff] }
  0x2e   :  { %v530_v35 = vpack.c.bf16 %v253_v34, %v252_v33  ;;  %v255_v37 = vld [vmem:[#allocation4 + $0x38] sm:$0xff]  ;;  %v256_v39 = vld [vmem:[#allocation4 + $0x40] sm:$0xff]  ;;  %v257_v40 = vld [vmem:[#allocation4 + $0x48] sm:$0xff] }
  0x2f   :  { %497 = vmatpush3.bf16.msra.mxu1 %v494_v8  ;;  %523 = vmatprep.subr.bf16.mxu0 %v522_v30  ;;  %v534_v38 = vpack.c.bf16 %v255_v37, %v254_v36  ;;  %v538_v41 = vpack.c.bf16 %v257_v40, %v256_v39  ;;  %v258_v42 = vld [vmem:[#allocation4 + $0x50] sm:$0xff]  ;;  %v259_v43 = vld [vmem:[#allocation4 + $0x58] sm:$0xff]  ;;  %v260_v45 = vld [vmem:[#allocation4 + $0x60] sm:$0xff] }
  0x30   :  { %499 = vmatprep.subr.bf16.mxu1 %v498_v11  ;;  %525 = vmatpush3.bf16.msra.mxu0 %v522_v30  ;;  %v542_v44 = vpack.c.bf16 %v259_v43, %v258_v42  ;;  %v261_v46 = vld [vmem:[#allocation4 + $0x68] sm:$0xff]  ;;  %v362_v48 = vld [vmem:[%s697_s2] ss:$0 sm:$0xff]  ;;  %v262_v55 = vld [vmem:[#allocation4 + $0x70] sm:$0xff] }
  0x31   :  { %527 = vmatprep.subr.bf16.mxu0 %v526_v32  ;;  %v546_v47 = vpack.c.bf16 %v261_v46, %v260_v45  ;;  %v263_v56 = vld [vmem:[#allocation4 + $0x78] sm:$0xff]  ;;  %v365_v58 = vld [vmem:[%s699_s4] ss:$0 sm:$0xff] }
  0x32   :  { %v550_v57 = vpack.c.bf16 %v263_v56, %v262_v55  ;;  %v366_v1 = vld [vmem:[%s701_s6] ss:$0 sm:$0xff] }
  0x33   :  { %501 = vmatpush3.bf16.msra.mxu1 %v498_v11 }
  0x34   :  { %503 = vmatprep.subr.bf16.mxu1 %v502_v14  ;;  %529 = vmatpush3.bf16.msra.mxu0 %v526_v32 }
  0x35   :  { %531 = vmatprep.subr.bf16.mxu0 %v530_v35 }
  0x37   :  { %505 = vmatpush3.bf16.msra.mxu1 %v502_v14 }
  0x38   :  { %507 = vmatprep.subr.bf16.mxu1 %v506_v17  ;;  %533 = vmatpush3.bf16.msra.mxu0 %v530_v35 }
  0x39   :  { %535 = vmatprep.subr.bf16.mxu0 %v534_v38 }
  0x3b   :  { %509 = vmatpush3.bf16.msra.mxu1 %v506_v17 }
  0x3c   :  { %511 = vmatprep.subr.bf16.mxu1 %v510_v20  ;;  %537 = vmatpush3.bf16.msra.mxu0 %v534_v38 }
  0x3d   :  { %539 = vmatprep.subr.bf16.mxu0 %v538_v41 }
  0x3f   :  { %513 = vmatpush3.bf16.msra.mxu1 %v510_v20 }
  0x40   :  { %515 = vmatprep.subr.bf16.mxu1 %v514_v23  ;;  %541 = vmatpush3.bf16.msra.mxu0 %v538_v41 }
  0x41   :  { %543 = vmatprep.subr.bf16.mxu0 %v542_v44 }
  0x43   :  { %517 = vmatpush3.bf16.msra.mxu1 %v514_v23 }
  0x44   :  { %519 = vmatprep.subr.bf16.mxu1 %v518_v26  ;;  %545 = vmatpush3.bf16.msra.mxu0 %v542_v44 }
  0x45   :  { %547 = vmatprep.subr.bf16.mxu0 %v546_v47 }
  0x47   :  { %521 = vmatpush3.bf16.msra.mxu1 %v518_v26 }
  0x48   :  { %549 = vmatpush3.bf16.msra.mxu0 %v546_v47 }
  0x49   :  { %551 = vmatprep.subr.bf16.mxu0 %v550_v57 }
  0x4c   :  { %553 = vmatpush3.bf16.msra.mxu0 %v550_v57 }
  0xfb   :  { %v419_v49 = vpop.f32.mrb[0].mxu0 }
  0xfc   :  { %v143_v50 = vadd.f32 %v419_v49, %v362_v48  ;;  %v137_v51 = vpop.f32.mrb[1].mxu0 }
  0xfd   :  { %v138_v52 = vadd.f32 %v362_v48, %v137_v51 }
  0xfe   :  { %v147_v54 = vmax.f32 %v143_v50, 0.0 }
  0xff   :  { %v146_v53 = vmax.f32 %v138_v52, 0.0 }
 0x101   :  { %452 = vmatprep.mubr.f32.mxu1 %v146_v53 }
 0x102   :  { %453 = vmatmul.mubr.f32.vlgmr.msra.gmra.mrb[0].mxu1 %v147_v54 }
 0x1d5   :  { %v454_v59 = vpop.f32.mrb[0].mxu1 }
 0x1d6   :  { %v243_v60 = vadd.f32 %v454_v59, %v365_v58  ;;  %v237_v61 = vpop.f32.mrb[1].mxu1 }
 0x1d7   :  { %v238_v62 = vadd.f32 %v365_v58, %v237_v61 }
 0x1d8   :  { %v247_v0 = vmax.f32 %v243_v60, 0.0 }
 0x1d9   :  { %v246_v63 = vmax.f32 %v238_v62, 0.0 }
 0x1db   :  { %487 = vmatprep.mubr.f32.mxu0 %v246_v63 }
 0x1dc   :  { %488 = vmatmul.mubr.f32.vlgmr.msra.gmra.mrb[2].mxu0 %v247_v0 }
 0x2af   :  { %v489_v2 = vpop.f32.mrb[2].mxu0 }
 0x2b0   :  { %v343_v3 = vadd.f32 %v489_v2, %v366_v1  ;;  %v337_v4 = vpop.f32.mrb[3].mxu0 }
 0x2b1   :  { %v338_v5 = vadd.f32 %v366_v1, %v337_v4 }
 0x2b3   :  { %v374_v6 = vpack.c.bf16 %v343_v3, %v338_v5 }
 0x2b5   :  { %375 = vst [vmem:[%s702_s7] sm:$0xff] %v374_v6  }
 0x2b6   :  { %360 = vsyncpa [#allocation3], 1 }
 0x2b7   :  { %361 = vsyncpa [#allocation5], 1 }

</bundles_post_ra>
